<compile_context>
chip_gen: v7x
topology: tpu7x:2x2x1
jax: 0.10.0
libtpu: 0.0.40
codegen_flags: <defaults>
</compile_context>

<pallas_src>
import math
import jax
import jax.numpy as jnp
from jax.experimental import pallas as pl
from jax.experimental.pallas import tpu as pltpu


def _round_up(x, m):
    return ((x + m - 1) // m) * m


def _cdiv(a, b):
    return (a + b - 1) // b


def _make_linear_kernel(*, k_axis, has_bias, x_resident, tk, k_total, mask_k):
    """One (tm, tn) output tile; the K reduction runs on grid axis `k_axis`."""

    def kernel(*refs):
        if has_bias:
            x_ref, w_ref, b_ref, o_ref, acc_ref = refs
        else:
            x_ref, w_ref, o_ref, acc_ref = refs
            b_ref = None

        k = pl.program_id(k_axis)

        @pl.when(k == 0)
        def _():
            acc_ref[...] = jnp.zeros_like(acc_ref)

        if x_resident and tk != k_total:
            # x block is the full (M, K) slab, DMA'd once; slice the K chunk in VMEM.
            start = pl.multiple_of(k * tk, tk)
            x_blk = x_ref[:, pl.ds(start, tk)]
        else:
            x_blk = x_ref[...]
        w_blk = w_ref[...]

        if mask_k:
            # K does not divide tk: zero the overhang of both tiles (garbage in the
            # partial trailing K block would otherwise corrupt valid outputs).
            valid = k_total - k * tk
            x_col = jax.lax.broadcasted_iota(jnp.int32, x_blk.shape, 1)
            x_blk = jnp.where(x_col < valid, x_blk, jnp.zeros_like(x_blk))
            w_col = jax.lax.broadcasted_iota(jnp.int32, w_blk.shape, 1)
            w_blk = jnp.where(w_col < valid, w_blk, jnp.zeros_like(w_blk))

        # x tile (tm, tk) . w tile (tn, tk), contracting the last dims -> (tm, tn).
        # Equivalent to x @ w.T; the MXU consumes the weight tile directly.
        acc_ref[...] += jax.lax.dot_general(
            x_blk,
            w_blk,
            dimension_numbers=(((1,), (1,)), ((), ())),
            preferred_element_type=jnp.float32,
        )

        @pl.when(k == pl.num_programs(k_axis) - 1)
        def _():
            acc = acc_ref[...]
            if has_bias:
                acc = acc + b_ref[...]  # (1, tn) f32 broadcast
            o_ref[...] = acc.astype(o_ref.dtype)

    return kernel


def pallas_linear(x, weight, bias=None, *, tm=None, tn=None, tk=None):
    """y = x @ weight.T (+ bias).  weight is (out_features, in_features)."""
    if x.dtype != weight.dtype:
        x = x.astype(weight.dtype)  # avoid f32 MXU multi-pass & halve x HBM traffic

    *lead, K = x.shape
    N, K_w = weight.shape
    assert K == K_w, "in_features mismatch"
    M = 1
    for d in lead:
        M *= d
    x2d = x.reshape(M, K)
    has_bias = bias is not None
    if has_bias:
        b2d = jnp.asarray(bias, dtype=jnp.float32).reshape(1, N)

    itemsize = jnp.dtype(weight.dtype).itemsize
    small_m = M <= 256

    if small_m:
        # ----- decode path: x fully VMEM-resident, weight streamed from HBM once -----
        tm_eff = M
        tn_target = tn if tn is not None else 1024
        tk_target = tk if tk is not None else 2048

        tn_eff = N if N <= tn_target else max(128, (tn_target // 128) * 128)
        # v7x has 2 TensorCores: try to expose >= 2 parallel N tiles (legal halving only).
        if _cdiv(N, tn_eff) < 2 and tn_eff % 256 == 0:
            tn_eff //= 2

        if K <= tk_target:
            tk_eff, x_resident, mask_k = K, True, False
        else:
            tkt = max(128, (tk_target // 128) * 128)
            tk_eff = 0
            t = tkt
            while t >= 128:            # prefer a multiple-of-128 divisor of K ...
                if K % t == 0:
                    tk_eff = t
                    break
                t -= 128
            if tk_eff:                 # ... so x can stay resident and be sliced in-kernel
                x_resident, mask_k = True, False
            else:                      # K not a multiple of 128: stream x, mask overhang
                tk_eff, x_resident, mask_k = tkt, False, (K % tkt != 0)

        grid = (_cdiv(N, tn_eff), _cdiv(K, tk_eff))
        k_axis = 1
        dims = ("parallel", "arbitrary")
        if x_resident:
            x_spec = pl.BlockSpec((M, K), lambda j, k: (0, 0))
        else:
            x_spec = pl.BlockSpec((M, tk_eff), lambda j, k: (0, k))
        w_spec = pl.BlockSpec((tn_eff, tk_eff), lambda j, k: (j, k))
        b_spec = pl.BlockSpec((1, tn_eff), lambda j, k: (0, j))
        o_spec = pl.BlockSpec((M, tn_eff), lambda j, k: (0, j))

        x_buf_elems = M * K if x_resident else M * tk_eff
        x_reads = 1 if x_resident else _cdiv(N, tn_eff)
        w_reads = 1
    else:
        # ----- large-M (prefill/training) path: big MXU tiles, K-last accumulation -----
        tm_target = tm if tm is not None else 1024
        tn_target = tn if tn is not None else 2048
        tk_target = tk if tk is not None else 1024

        ladder = [t for t in (1024, 512, 256, 128) if t <= max(128, tm_target)] or [128]
        # pick the tm with the least padded work; ties -> larger tile (better intensity)
        tm_eff = min(ladder, key=lambda t: (_round_up(M, t), -t))
        tn_eff = N if N <= tn_target else max(128, (tn_target // 128) * 128)
        tk_eff = K if K <= tk_target else max(128, (tk_target // 128) * 128)
        mask_k = (K % tk_eff != 0)
        x_resident = False

        # v7x megacore: keep >= 2 parallel output tiles when we can do so legally.
        while _cdiv(M, tm_eff) * _cdiv(N, tn_eff) < 2:
            if tn_eff % 256 == 0:
                tn_eff //= 2
            elif tm_eff % 256 == 0:
                tm_eff //= 2
            else:
                break

        grid = (_cdiv(M, tm_eff), _cdiv(N, tn_eff), _cdiv(K, tk_eff))
        k_axis = 2
        dims = ("parallel", "parallel", "arbitrary")
        x_spec = pl.BlockSpec((tm_eff, tk_eff), lambda i, j, k: (i, k))
        w_spec = pl.BlockSpec((tn_eff, tk_eff), lambda i, j, k: (j, k))
        b_spec = pl.BlockSpec((1, tn_eff), lambda i, j, k: (0, j))
        o_spec = pl.BlockSpec((tm_eff, tn_eff), lambda i, j, k: (i, j))

        x_buf_elems = tm_eff * tk_eff
        x_reads = _cdiv(N, tn_eff)
        w_reads = _cdiv(M, tm_eff)

    in_specs = [x_spec, w_spec] + ([b_spec] if has_bias else [])
    operands = [x2d, weight] + ([b2d] if has_bias else [])

    # ---- VMEM budget: the big tiles exceed the scoped defaults, so raise the limit ----
    need = (2 * x_buf_elems * itemsize          # x (double buffered)
            + 2 * tn_eff * tk_eff * itemsize    # weight (double buffered)
            + 2 * tm_eff * tn_eff * itemsize    # output (double buffered)
            + tm_eff * tn_eff * 4)              # f32 accumulator scratch
    if has_bias:
        need += 2 * tn_eff * 4
    vmem_limit = max(int(need * 1.3) + (1 << 20), 32 << 20)
    try:
        cap = pltpu.get_tpu_info().vmem_capacity_bytes
    except Exception:
        cap = None
    vmem_limit = min(vmem_limit, int(cap * 0.9) if cap else (56 << 20))

    cost = pl.CostEstimate(
        flops=2 * M * N * K,
        transcendentals=0,
        bytes_accessed=int((M * K * x_reads + N * K * w_reads + M * N) * itemsize),
    )

    kernel = _make_linear_kernel(
        k_axis=k_axis, has_bias=has_bias, x_resident=x_resident,
        tk=tk_eff, k_total=K, mask_k=mask_k)

    out2d = pl.pallas_call(
        kernel,
        out_shape=jax.ShapeDtypeStruct((M, N), weight.dtype),
        grid_spec=pltpu.PrefetchScalarGridSpec(
            num_scalar_prefetch=0,
            grid=grid,
            in_specs=in_specs,
            out_specs=o_spec,
            scratch_shapes=[pltpu.VMEM((tm_eff, tn_eff), jnp.float32)],
        ),
        compiler_params=pltpu.CompilerParams(
            dimension_semantics=dims,
            vmem_limit_bytes=vmem_limit,
        ),
        cost_estimate=cost,
    )(*operands)

    return out2d.reshape(*lead, N)


def init_linear_params(key, in_features, out_features, dtype=jnp.bfloat16):
    """kaiming_normal_(mode='fan_out', nonlinearity='linear'):
    std = gain / sqrt(fan_out) = 1 / sqrt(out_features)."""
    std = 1.0 / math.sqrt(out_features)
    w = jax.random.normal(key, (out_features, in_features), dtype=jnp.float32) * std
    return w.astype(dtype)


if __name__ == "__main__":
    key = jax.random.PRNGKey(0)
    keys = jax.random.split(key, 10)

    def ref_linear(x, w, b=None):
        y = jnp.dot(x.astype(jnp.float32), w.astype(jnp.float32).T)
        return y if b is None else y + b

    # --- Test 1: default module config (bias=False), decode path, aligned shapes ---
    x1 = jax.random.normal(keys[0], (2, 8, 128), dtype=jnp.float32).astype(jnp.bfloat16)
    w1 = init_linear_params(keys[1], 128, 256)
    y1 = jax.block_until_ready(pallas_linear(x1, w1))
    assert y1.shape == (2, 8, 256) and y1.dtype == jnp.bfloat16
    assert jnp.allclose(y1.astype(jnp.float32), ref_linear(x1, w1), atol=2e-2, rtol=2e-2)

    # --- Test 2: bias=True + non-tile-multiple in/out features (decode, no padding) ---
    x2 = jax.random.normal(keys[2], (3, 7, 96), dtype=jnp.float32).astype(jnp.bfloat16)
    w2 = init_linear_params(keys[3], 96, 200)
    b2 = jax.random.normal(keys[4], (200,), dtype=jnp.float32) * 0.1
    y2 = jax.block_until_ready(pallas_linear(x2, w2, b2))
    assert y2.shape == (3, 7, 200) and y2.dtype == jnp.bfloat16
    assert jnp.allclose(y2.astype(jnp.float32), ref_linear(x2, w2, b2), atol=2e-2, rtol=2e-2)

    # --- Test 3: large-M path with partial M/N blocks and in-kernel K masking ---
    x3 = jax.random.normal(keys[5], (2, 150, 200), dtype=jnp.float32).astype(jnp.bfloat16)
    w3 = init_linear_params(keys[6], 200, 160)
    b3 = jax.random.normal(keys[7], (160,), dtype=jnp.float32) * 0.1
    y3 = jax.block_until_ready(pallas_linear(x3, w3, b3, tm=256, tn=128, tk=128))
    assert y3.shape == (2, 150, 160) and y3.dtype == jnp.bfloat16
    assert jnp.allclose(y3.astype(jnp.float32), ref_linear(x3, w3, b3), atol=2e-2, rtol=2e-2)

    # --- Test 4: decode path with resident x sliced over multiple K chunks ---
    x4 = jax.random.normal(keys[8], (2, 4, 512), dtype=jnp.float32).astype(jnp.bfloat16)
    w4 = init_linear_params(keys[9], 512, 256)
    b4 = jax.random.normal(keys[4], (256,), dtype=jnp.float32) * 0.1
    y4 = jax.block_until_ready(pallas_linear(x4, w4, b4, tn=128, tk=128))
    assert y4.shape == (2, 4, 256) and y4.dtype == jnp.bfloat16
    assert jnp.allclose(y4.astype(jnp.float32), ref_linear(x4, w4, b4), atol=3e-2, rtol=2e-2)

    print("KERNEL_OK")
</pallas_src>

<mosaic_0001>
module attributes {stable_mosaic.version = 11 : i64} {
  func.func @kernel(%arg0: i32, %arg1: i32, %arg2: memref<16x128xbf16, #tpu.memory_space<vmem>>, %arg3: memref<128x128xbf16, #tpu.memory_space<vmem>>, %arg4: memref<16x128xbf16, #tpu.memory_space<vmem>>, %arg5: memref<16x128xf32, #tpu.memory_space<vmem>>) attributes {dimension_semantics = [#tpu.dimension_semantics<parallel>, #tpu.dimension_semantics<arbitrary>], iteration_bounds = array<i64: 2, 1>, scalar_prefetch = 0 : i64, scratch_operands = 1 : i64, tpu.core_type = #tpu.core_type<tc>, window_params = [{pipeline_mode = #tpu.pipeline_mode<synchronous>, transform_indices = @transform_0, window_bounds = array<i64: 16, 128>}, {transform_indices = @transform_1, window_bounds = array<i64: 128, 128>}, {transform_indices = @transform_2, window_bounds = array<i64: 16, 128>}]} {
    %c0_i32 = arith.constant 0 : i32
    %0 = arith.cmpi eq, %arg1, %c0_i32 : i32
    %1 = arith.extui %0 : i1 to i32
    %c0_i32_0 = arith.constant 0 : i32
    %2 = arith.cmpi ne, %1, %c0_i32_0 : i32
    scf.if %2 {
      %cst_10 = arith.constant 0.000000e+00 : f32
      %12 = vector.broadcast %cst_10 : f32 to vector<16x128xf32>
      %c0_11 = arith.constant 0 : index
      %c0_12 = arith.constant 0 : index
      %13 = vector.load %arg5[%c0_11, %c0_12] : memref<16x128xf32, #tpu.memory_space<vmem>>, vector<16x128xf32>
      tpu.vector_store %arg5[%c0_11, %c0_12], %12 {strides = array<i32>} : memref<16x128xf32, #tpu.memory_space<vmem>>, vector<16x128xf32>,
    } else {
    }
    %c0 = arith.constant 0 : index
    %c0_1 = arith.constant 0 : index
    %3 = vector.load %arg2[%c0, %c0_1] : memref<16x128xbf16, #tpu.memory_space<vmem>>, vector<16x128xbf16>
    %c0_2 = arith.constant 0 : index
    %c0_3 = arith.constant 0 : index
    %4 = vector.load %arg3[%c0_2, %c0_3] : memref<128x128xbf16, #tpu.memory_space<vmem>>, vector<128x128xbf16>
    %c0_4 = arith.constant 0 : index
    %c0_5 = arith.constant 0 : index
    %5 = vector.load %arg5[%c0_4, %c0_5] : memref<16x128xf32, #tpu.memory_space<vmem>>, vector<16x128xf32>
    %cst = arith.constant dense<0.000000e+00> : vector<16x128xf32>
    %6 = tpu.matmul %3, %4, %cst {dimension_numbers = #tpu.dot_dimension_numbers<[1], [1], [0], [0], [0, 0, 1, 0], [], []>} : vector<16x128xbf16>, vector<128x128xbf16>, vector<16x128xf32> -> vector<16x128xf32>
    %7 = arith.addf %5, %6 : vector<16x128xf32>
    %c0_6 = arith.constant 0 : index
    %c0_7 = arith.constant 0 : index
    %8 = vector.load %arg5[%c0_6, %c0_7] : memref<16x128xf32, #tpu.memory_space<vmem>>, vector<16x128xf32>
    tpu.vector_store %arg5[%c0_6, %c0_7], %7 {strides = array<i32>} : memref<16x128xf32, #tpu.memory_space<vmem>>, vector<16x128xf32>,
    %c0_i32_8 = arith.constant 0 : i32
    %9 = arith.cmpi eq, %arg1, %c0_i32_8 : i32
    %10 = arith.extui %9 : i1 to i32
    %c0_i32_9 = arith.constant 0 : i32
    %11 = arith.cmpi ne, %10, %c0_i32_9 : i32
    scf.if %11 {
      %c0_10 = arith.constant 0 : index
      %c0_11 = arith.constant 0 : index
      %12 = vector.load %arg5[%c0_10, %c0_11] : memref<16x128xf32, #tpu.memory_space<vmem>>, vector<16x128xf32>
      %13 = arith.truncf %12 : vector<16x128xf32> to vector<16x128xbf16>
      %c0_12 = arith.constant 0 : index
      %c0_13 = arith.constant 0 : index
      %14 = vector.load %arg4[%c0_12, %c0_13] : memref<16x128xbf16, #tpu.memory_space<vmem>>, vector<16x128xbf16>
      tpu.vector_store %arg4[%c0_12, %c0_13], %13 {strides = array<i32>} : memref<16x128xbf16, #tpu.memory_space<vmem>>, vector<16x128xbf16>,
    } else {
    }
    return
  }
  func.func @transform_0(%arg0: i32, %arg1: i32) -> (i32, i32) {
    %c0_i32 = arith.constant 0 : i32
    %c0_i32_0 = arith.constant 0 : i32
    %c0_i32_1 = arith.constant 0 : i32
    return %c0_i32, %c0_i32_0 : i32, i32
  }
  func.func @transform_1(%arg0: i32, %arg1: i32) -> (i32, i32) {
    %c0_i32 = arith.constant 0 : i32
    return %arg0, %arg1 : i32, i32
  }
  func.func @transform_2(%arg0: i32, %arg1: i32) -> (i32, i32) {
    %c0_i32 = arith.constant 0 : i32
    %c0_i32_0 = arith.constant 0 : i32
    return %c0_i32, %arg0 : i32, i32
  }
}

</mosaic_0001>

<bundles_post_ra>
// kernel: tpu_custom_call.1
= control target key start
LH: loop header
LB: loop body
LE: loop exit
PB: predicated region body
PF: predicated region fallthrough
CT: control target
= control target key end

     0   :  { %7 = vsyncpa [#allocation4], 0  ;;  %s992_s0 = inlined_call_operand.hbm [shape: bf16[16,128], index: 0, kind: input, shape index: {}]   ;;  %s993_s1 = inlined_call_operand.hbm [shape: bf16[256,128], index: 1, kind: input, shape index: {}]   ;;  %s994_s2 = inlined_call_operand.hbm [shape: bf16[16,256], index: 2, kind: output, shape index: {}]  }
   0x1   :  { %8 = vsyncpa [#allocation7], 0 }
   0x2   :  { %10 = vsyncpa [#allocation7 + $0x1], 0 }
   0x3   :  { %11 = vsyncpa [#allocation5], 0 }
   0x4   :  { %13 = vsyncpa [#allocation5 + $0x1], 0  ;;  %s766_s9 = smov 0   ;;  %s768_s10 = smov 0  }
   0x5   :  { %s770_s11 = smov 0   ;;  %s772_s12 = smov 0  }
   0x6   :  { %s774_s13 = smov 0   ;;  %s776_s14 = smov 0  }
   0x7 LB: > { %s442_s15 = sadd.s32 4294967295, %s739_s14   ;;  %s443_s16 = sadd.s32 4294967294, %s739_s14   ;;  %s739_s14 = sphi %s776_s14, %s19_s14   ;;  %s735_s13 = sphi %s774_s13, %s1018_s13   ;;  %s731_s12 = sphi %s772_s12, %s1017_s12   ;;  %s727_s11 = sphi %s770_s11, %s1016_s11   ;;  %s723_s10 = sphi %s768_s10, %s1015_s10   ;;  %s719_s9 = sphi %s766_s9, %s1014_s9  }
   0x8   : > { %p74_p0 = scmp.ne.s32.totalorder %s723_s10, %s719_s9  ;;  %p800_p1 = scmp.eq.s32.totalorder %s442_s15, 0 }
   0x9   : > { %p804_p2 = scmp.eq.s32.totalorder %s442_s15, 1  ;;  %p104_p3 = scmp.eq.s32.totalorder %s443_s16, 1 }
   0xa   : > { %s999_s17 = scalar_select %p800_p1, 1, 0 }
   0xb   : > { %s1000_s18 = scalar_select %p804_p2, 1, 0 }
   0xc   : > { %p810_p4 = por %p800_p1, %p74_p0  ;;  %p444_p5 = scmp.ge.s32.totalorder %s739_s14, 1 }
   0xd   : > { %p815_p6 = por %p104_p3, %p74_p0  ;;  %p111_p7 = scmp.lt.s32.totalorder %s739_s14, 3 }
   0xe   : > { %s1001_s19 = scalar_select %p810_p4, 1, 0 }
   0xf   : > { %s1002_s20 = scalar_select %p815_p6, 1, 0 }
  0x10   : > { %p820_p8 = pnand %p444_p5, %p111_p7  ;;  %s741_s22 = smov [#allocation3]  }
  0x11   : > { %s123_s23 = sshll.u32 %s741_s22, 4  ;;  %s31_s25 = sadd.s32 1, %s735_s13  ;;  %s124_s23 = int_to_ptr.vmem [resolvable:$true] %s123_s23 }
  0x12   : > { %s1003_s21 = scalar_select %p820_p8, 1, 0 }
  0x13   : > { %p514_p9 = pneg %p820_p8  ;;  %s595_s28 = scalar_lea.hbm %s992_s0, 128 }
  0x14   : > { %p596_p12 = scmp.ne.s32.totalorder %s992_s0, %s595_s28  ;;  %p602_p5 = scmp.lt.u32.totalorder %s595_s28, %s992_s0 }
  0x15   : > { %p829_p11 = pnand %p514_p9, %p800_p1 }
  0x17   : > { %p597_p13 = pneg %p829_p11 }
  0x19   : > { %p598_p0 = pnand %p597_p13, %p596_p12 }
  0x1b   : > { %p599_p3 = pneg %p598_p0 }
  0x1d   : > { %p604_p7 = pnand %p602_p5, %p599_p3 }
  0x1f   : > { %607 = shalt.err (!%p604_p7)
}
  0x20   : > { %s608_s5 = scalar_lea.vmem %s124_s23, 128  ;;  %p616_p4 = scmp.lt.s32.totalorder %s124_s23, %s124_s23 }
  0x21   : > { %p609_p9 = scmp.ne.s32.totalorder %s124_s23, %s608_s5  ;;  %p617_p1 = scmp.lt.s32.totalorder %s608_s5, %s608_s5 }
  0x23   : > { %p611_p10 = pnand %p609_p9, %p597_p13  ;;  %p618_p8 = por %p617_p1, %p616_p4 }
  0x25   : > { %p612_p6 = pneg %p611_p10 }
  0x27   : > { %p619_p2 = pnand %p618_p8, %p612_p6 }
  0x29   : > { %622 = shalt.err (!%p619_p2)
}
  0x2a   : > { %s742_s6 = smov 64   ;;  %s743_s7 = smov 4  }
  0x2b   : > { %517 = dma.hbm_to_vmem [thread:$0]  (!%p829_p11), %s992_s0, 128, %s124_s23, [#allocation4], %s742_s6, %s742_s6, %s743_s7  }
  0x2c   : > { %p33_p1 = scmp.ge.s32.totalorder %s31_s25, 2  ;;  %s61_s16 = sadd.s32 1, %s727_s11 }
  0x2d   : > { %p68_p2 = scmp.ne.s32.totalorder %s727_s11, %s723_s10  ;;  %p69_p4 = scmp.eq.s32.totalorder %s739_s14, 0 }
  0x2e   : > { %s1020_s25 = smov (%p33_p1, %s31_s25), 0  ;;  %p1006_p8 = scmp.ne.s32.totalorder %s1000_s18, 0 }
  0x2f   : > { %p859_p6 = por %p69_p4, %p68_p2  ;;  %s56_s26 = ssub.s32 %s735_s13, %s1020_s25 }
  0x30   : > { %p865_p10 = por %p1006_p8, %p68_p2  ;;  %p527_p12 = scmp.lt.s32.totalorder %s739_s14, 2 }
  0x31   : > { %p59_p11 = scmp.eq.s32.totalorder %s56_s26, 0  ;;  %s137_s23 = sand.u32 1, %s727_s11  }
  0x32   : > { %s447_s27 = sshll.u32 %s137_s23, 6  ;;  %s469_s29 = sshll.u32 %s735_s13, 10 }
  0x33   : > { %s874_s28 = scalar_select %p59_p11, %s727_s11, %s61_s16  }
  0x34   : > { %s880_s4 = scalar_lea.hbm %s993_s1, %s469_s29  ;;  %s141_s18 = scalar_lea.vmem [#allocation6], %s447_s27 }
  0x35   : > { %s149_s5 = sshll.u32 %s141_s18, 4  ;;  %p886_p13 = pnand %p527_p12, %p859_p6  ;;  %s882_s5 = int_to_ptr.vmem [resolvable:$true] %s149_s5 }
  0x36   : > { %s890_s15 = scalar_lea.sflag [#allocation7], %s137_s23  ;;  %s623_s16 = scalar_lea.hbm %s880_s4, 1024 }
  0x37   : > { %p624_p0 = scmp.ne.s32.totalorder %s880_s4, %s623_s16  ;;  %p625_p3 = pneg %p886_p13 }
  0x38   : > { %s628_s22 = scalar_lea.hbm %s993_s1, 2048  ;;  %p629_p9 = scmp.lt.u32.totalorder %s880_s4, %s993_s1 }
  0x39   : > { %p626_p5 = pnand %p625_p3, %p624_p0  ;;  %p630_p1 = scmp.lt.u32.totalorder %s628_s22, %s623_s16 }
  0x3a   : > { %p632_p4 = scmp.lt.u32.totalorder %s623_s16, %s880_s4 }
  0x3b   : > { %p627_p7 = pneg %p626_p5  ;;  %p631_p2 = por %p630_p1, %p629_p9 }
  0x3d   : > { %p633_p6 = por %p632_p4, %p631_p2 }
  0x3f   : > { %p634_p8 = pnand %p633_p6, %p627_p7 }
  0x41   : > { %637 = shalt.err (!%p634_p8)
}
  0x42   : > { %s638_s23 = scalar_lea.vmem %s882_s5, 1024  ;;  %s744_s3 = smov [#allocation6]  }
  0x43   : > { %p639_p12 = scmp.ne.s32.totalorder %s882_s5, %s638_s23  ;;  %s643_s18 = sshll.u32 %s744_s3, 4  ;;  %s644_s18 = int_to_ptr.vmem [resolvable:$false] %s643_s18 }
  0x44   : > { %s645_s26 = scalar_lea.vmem %s644_s18, 2048  ;;  %p646_p5 = scmp.lt.s32.totalorder %s882_s5, %s644_s18 }
  0x45   : > { %p641_p11 = pnand %p639_p12, %p625_p3  ;;  %p647_p9 = scmp.lt.s32.totalorder %s645_s26, %s638_s23 }
  0x47   : > { %p642_p0 = pneg %p641_p11  ;;  %p648_p1 = por %p647_p9, %p646_p5 }
  0x49   : > { %p649_p2 = pnand %p648_p1, %p642_p0 }
  0x4b   : > { %652 = shalt.err (!%p649_p2)
}
  0x4c   : > { %521 = dma.hbm_to_vmem [thread:$0]  (!%p886_p13), %s880_s4, 1024, %s882_s5, %s890_s15, %s742_s6, %s742_s6, %s743_s7  }
  0x4d   : > { %p1009_p3 = scmp.ne.s32.totalorder %s1003_s21, 0 }
  0x4e   : > { %p1010_p7 = scmp.ne.s32.totalorder (!%p1009_p3), %s999_s17, 0 }
  0x4f   : > { %161 = sbr.rel (%p1009_p3) target bundleno = 388 (0x184), region = 28 }
  0x56   : > { %706 = dma.done.wait (%p1010_p7), [#allocation4], 128  }
  0x57   : > { %708 = vsyncadd (%p1010_p7), [#allocation4], 4294967168  ;;  %s928_s16 = sand.u32 1, %s723_s10   ;;  %p1011_p4 = scmp.ne.s32.totalorder %s1001_s19, 0 }
  0x58   : > { %s452_s8 = sshll.u32 %s928_s16, 6  ;;  %s168_s27 = scalar_lea.sflag [#allocation7], %s928_s16 }
  0x59   : > { %s171_s22 = scalar_lea.vmem [#allocation6], %s452_s8 }
  0x5a   : > { %710 = dma.done.wait (%p1011_p4), %s168_s27, 1024  }
  0x5b   : > { %712 = vsyncadd (%p1011_p4), %s168_s27, 4294966272  ;;  %v745_v0 = vmov 0.0   ;;  %vm746_vm0 = vmmov 0   ;;  %v586_v1 = vld [vmem:[%s171_s22] sm:$0xff]   ;;  %v587_v2 = vld [vmem:[%s171_s22 + $0x8] sm:$0xff]   ;;  %s453_s17 = sshll.u32 %s928_s16, 3 }
  0x5c   : > { %486 = vmatprep.subr.bf16.mxu0 %v745_v0  ;;  %502 = vmatprep.mubr.msk.bf16.mxu0 %vm746_vm0, %v745_v0  ;;  %v588_v3 = vld [vmem:[%s171_s22 + $0x10] sm:$0xff]   ;;  %v589_v4 = vld [vmem:[%s171_s22 + $0x18] sm:$0xff]   ;;  %v590_v5 = vld [vmem:[%s171_s22 + $0x20] sm:$0xff]   ;;  %s191_s19 = scalar_lea.vmem [#allocation8], %s453_s17  ;;  %s466_s6 = sshll.u32 %s731_s12, 6 }
  0x5d   : > { %487 = vmatpush3.bf16.xpose.msra.mxu0 %v586_v1  ;;  %v591_v6 = vld [vmem:[%s171_s22 + $0x28] sm:$0xff]   ;;  %v592_v7 = vld [vmem:[%s171_s22 + $0x30] sm:$0xff]   ;;  %v593_v8 = vld [vmem:[%s171_s22 + $0x38] sm:$0xff]   ;;  %s347_s21 = sshll.u32 %s191_s19, 4  ;;  %s943_s5 = scalar_lea.hbm %s994_s2, %s466_s6  ;;  %s938_s21 = int_to_ptr.vmem [resolvable:$true] %s347_s21 }
  0x5e   : > { %488 = vmatprep.subr.bf16.mxu0 %v745_v0  ;;  %v594_v9 = vld [vmem:[#allocation3] sm:$0xff]   ;;  %s335_s15 = scalar_lea.sflag [#allocation5], %s928_s16  ;;  %s653_s29 = scalar_lea.vmem %s938_s21, 128 }
  0x5f   : > { %p654_p13 = scmp.ne.s32.totalorder %s938_s21, %s653_s29  ;;  %s747_s12 = smov [#allocation8]  }
  0x60   : > { %s657_s30 = sshll.u32 %s747_s12, 4  ;;  %s658_s30 = int_to_ptr.vmem [resolvable:$false] %s657_s30 }
  0x61   : > { %p655_p6 = pnand %p654_p13, %p865_p10  ;;  %s659_s23 = scalar_lea.vmem %s658_s30, 256 }
  0x62   : > { %p660_p12 = scmp.lt.s32.totalorder %s938_s21, %s658_s30  ;;  %p661_p11 = scmp.lt.s32.totalorder %s659_s23, %s653_s29 }
  0x63   : > { %p656_p8 = pneg %p655_p6 }
  0x64   : > { %p662_p0 = por %p661_p11, %p660_p12 }
  0x65   : > { %489 = vmatpush3.bf16.xpose.msra.mxu0 %v587_v2 }
  0x66   : > { %490 = vmatprep.subr.bf16.mxu0 %v745_v0  ;;  %p663_p5 = pnand %p662_p0, %p656_p8 }
  0x6d   : > { %491 = vmatpush3.bf16.xpose.msra.mxu0 %v588_v3 }
  0x6e   : > { %492 = vmatprep.subr.bf16.mxu0 %v745_v0 }
  0x75   : > { %493 = vmatpush3.bf16.xpose.msra.mxu0 %v589_v4 }
  0x76   : > { %494 = vmatprep.subr.bf16.mxu0 %v745_v0 }
  0x7d   : > { %495 = vmatpush3.bf16.xpose.msra.mxu0 %v590_v5 }
  0x7e   : > { %496 = vmatprep.subr.bf16.mxu0 %v745_v0 }
  0x85   : > { %497 = vmatpush3.bf16.xpose.msra.mxu0 %v591_v6 }
  0x86   : > { %498 = vmatprep.subr.bf16.mxu0 %v745_v0 }
  0x8d   : > { %499 = vmatpush3.bf16.xpose.msra.mxu0 %v592_v7 }
  0x8e   : > { %500 = vmatprep.subr.bf16.mxu0 %v745_v0 }
  0x95   : > { %501 = vmatpush3.bf16.xpose.msra.mxu0 %v593_v8 }
  0x9c   : > { %503 = vmatmul.mubr.bf16.vlgmr.msra.gmra.mrb[0].mxu0 %v594_v9 }
 0x16f   : > { %v308_v10 = vpop.f32.mrb[0].mxu0 }
 0x170   : > { %v504_v11 = vpop.f32.mrb[1].mxu0 }
 0x171   : > { %v311_v12 = vpop.f32.mrb[2].mxu0 }
 0x172   : > { %v475_v13 = vpack.c.bf16 %v311_v12, %v308_v10  ;;  %v505_v14 = vpop.f32.mrb[3].mxu0 }
 0x174   : > { %476 = vst [vmem:[%s191_s19] sm:$0xff] %v475_v13  }
 0x175   : > { %666 = shalt.err (!%p663_p5)
}
 0x176   : > { %s667_s3 = scalar_lea.hbm %s943_s5, 128  ;;  %s671_s8 = scalar_lea.hbm %s994_s2, 256 }
 0x177   : > { %p668_p9 = scmp.ne.s32.totalorder %s943_s5, %s667_s3  ;;  %p672_p3 = scmp.lt.u32.totalorder %s943_s5, %s994_s2 }
 0x178   : > { %p673_p7 = scmp.lt.u32.totalorder %s671_s8, %s667_s3  ;;  %p675_p13 = scmp.lt.u32.totalorder %s667_s3, %s943_s5 }
 0x179   : > { %p669_p1 = pnand %p668_p9, %p865_p10 }
 0x17a   : > { %p674_p4 = por %p673_p7, %p672_p3 }
 0x17b   : > { %p670_p2 = pneg %p669_p1 }
 0x17c   : > { %p676_p6 = por %p675_p13, %p674_p4 }
 0x17e   : > { %p677_p8 = pnand %p676_p6, %p670_p2 }
 0x180   : > { %680 = shalt.err (!%p677_p8)
}
 0x181   : > { %s748_s17 = smov 64   ;;  %s749_s19 = smov 128  }
 0x182   : > { %s750_s6 = smov 4  }
 0x183   : > { %512 = dma.vmem_to_hbm [thread:$0]  (%p865_p10), %s938_s21, 128, %s943_s5, %s335_s15, %s748_s17, %s749_s19, %s750_s6  }
 0x184 PF: > { %s362_s7 = sand.u32 1, %s719_s9   ;;  %p1012_p12 = scmp.ne.s32.totalorder %s1002_s20, 0 }
 0x185   : > { %p1013_p11 = scmp.ge.s32.totalorder %s739_s14, 2  ;;  %s363_s4 = scalar_lea.sflag [#allocation5], %s362_s7 }
 0x187   : > { %p523_p0 = pnand %p1013_p11, %p1012_p12 }
 0x189   : > { %714 = dma.done.wait (!%p523_p0), %s363_s4, 128  }
 0x18a   : > { %716 = vsyncadd (!%p523_p0), %s363_s4, 4294967168  ;;  %s19_s14 = sadd.s32 1, %s739_s14   ;;  %s1014_s9 = smov %s723_s10 }
 0x18b   : > { %p16_p5 = scmp.ge.s32.totalorder %s19_s14, 4   ;;  %s1015_s10 = smov %s727_s11 }
 0x18c   : > { %s1016_s11 = smov %s874_s28  ;;  %s1017_s12 = smov %s735_s13 }
 0x18d   : > { %s1018_s13 = smov %s1020_s25  ;;  %18 = sbr.rel (!%p16_p5) target bundleno = 7 (0x7), region = 86 }
 0x194   :  { %368 = vsyncpa [#allocation4], 1 }
 0x195   :  { %370 = vsyncpa [#allocation4 + $0x1], 1 }
 0x196   :  { %371 = vsyncpa [#allocation7], 1 }
 0x197   :  { %373 = vsyncpa [#allocation7 + $0x1], 1 }
 0x198   :  { %374 = vsyncpa [#allocation5], 1 }
 0x199   :  { %376 = vsyncpa [#allocation5 + $0x1], 1 }

</bundles_post_ra>
